<compile_context>
chip_gen: v7x
topology: tpu7x:2x2x1
jax: 0.10.0
libtpu: 0.0.40
codegen_flags: <defaults>
</compile_context>

<pallas_src>
import jax
import jax.numpy as jnp
from jax.experimental import pallas as pl
from jax.experimental.pallas import tpu as pltpu

REGIME_DIM = 8
HIDDEN_DIM = 32
OUTPUT_DIM = 16

SLAB_W = 128          # lane width of the packed parameter slabs
OUT_W = 128           # lane width of the packed output block (unmasked stores)
OUT_USED = 2 * OUTPUT_DIM + 4 + REGIME_DIM     # 44 useful output lanes

# ---- weight-slab row offsets (all 8-row aligned, bf16, 128 lanes) ----
RW_X, RW_A, RW_B, RW_C, RW_FE2, RW_FU1, RW_FU2, RW_HEAD = (
    0, 8, 56, 80, 104, 184, 232, 296)
W_ROWS = 328

# ---- bias-slab row indices (f32, 128 lanes) ----
(BR_A, BR_B, BR_FE2, BR_FU1, BR_LN1G, BR_LN1B, BR_FU2, BR_LN2G, BR_LN2B,
 BR_HEAD) = range(10)
B_ROWS = 16


# ================================= kernel ==================================

def _regime_embedder_kernel(x_ref, dyn_ref, w_ref, b_ref, out_ref):
    f32 = jnp.float32
    bf16 = jnp.bfloat16

    def w(r, rows, cols):                 # static weight-slab slice (bf16)
        return w_ref[r:r + rows, 0:cols]

    def b(i, cols):                       # static bias-slab row -> [1, cols]
        return b_ref[i:i + 1, 0:cols]

    def mm(a, wm):                        # bf16 x bf16 -> f32 MXU matmul
        return jnp.dot(a.astype(bf16), wm, preferred_element_type=f32)

    def relu(a):
        return jnp.maximum(a, 0.0)

    x = x_ref[...]                        # [tb, 8] current regime vectors (f32)
    tb = x.shape[0]

    x_bias = dyn_ref[0:1, 0:80]           # imp_b1 | tn_b1 + h_t1 | fe_b1 + h_fh
    temporal = dyn_ref[1:2, 0:16]         # temporal_feat (per-call constant)

    # 1) fused first layer:  x @ [imp_w1 | tn_w1(cur) | fe_w1(cur)]
    x_out = mm(x, w(RW_X, 8, 80)) + x_bias                         # [tb, 80]

    # 2) block-diag:  relu([imp_pre | t1_pre]) @ [imp_w2 (+) tn_w2]
    lhs_a = relu(x_out[:, 0:48])                                   # lane-0 slice
    out_a = mm(lhs_a, w(RW_A, 48, 24)) + b(BR_A, 24)               # [imp(8)|t2(16)]

    sig_a = jax.nn.sigmoid(out_a)
    rel_a = relu(out_a)
    lane24 = jax.lax.broadcasted_iota(jnp.int32, out_a.shape, 1)
    x_pad = jnp.concatenate([x, jnp.zeros((tb, 16), f32)], axis=-1)
    importance = sig_a[:, 0:8]                                     # [tb, 8]
    lhs_b = jnp.where(lane24 < 8, x_pad * sig_a, rel_a)   # [weighted(8)|t2(16)]

    # 3) block-diag:  [weighted | t2] @ [outp_w (+) tn_w3]
    out_b = mm(lhs_b, w(RW_B, 24, 24)) + b(BR_B, 24)    # [attn(16)|tsc(4)|0(4)]
    attn_feat = out_b[:, 0:16]
    tscores = out_b[:, 16:20]

    # 4) tscores @ fe_w1(score rows), RHS widened so output lands on lanes 48:80
    fe_add = mm(out_b, w(RW_C, 24, 80))                            # [tb, 80]
    f_act = relu(x_out + fe_add)          # lanes 48:80 = feature-extractor hidden

    # 5) fe layer 2: fe_w2 stored with 48 leading zero rows (no rotate needed)
    trans_feat = mm(f_act, w(RW_FE2, 80, 16)) + b(BR_FE2, 16)      # [tb, 16]

    # 6) feature fusion
    def layer_norm(z, g, bb):
        mu = jnp.mean(z, axis=-1, keepdims=True)
        var = jnp.mean((z - mu) * (z - mu), axis=-1, keepdims=True)
        return (z - mu) * jax.lax.rsqrt(var + 1e-5) * g + bb

    combined = jnp.concatenate(
        [attn_feat, trans_feat, jnp.broadcast_to(temporal, (tb, 16))], axis=-1)
    z1 = mm(combined, w(RW_FU1, 48, 64)) + b(BR_FU1, 64)           # [tb, 64]
    a1 = relu(layer_norm(z1, b(BR_LN1G, 64), b(BR_LN1B, 64)))
    z2 = mm(a1, w(RW_FU2, 64, 32)) + b(BR_FU2, 32)                 # [tb, 32]
    fused = relu(layer_norm(z2, b(BR_LN2G, 32), b(BR_LN2B, 32)))

    # 7) heads (mean | std fused into one matmul)
    heads = mm(fused, w(RW_HEAD, 32, 32)) + b(BR_HEAD, 32)         # [tb, 32]
    # PyTorch Softplus (beta=1, threshold=20) + 1e-6 on the std half.
    sp = jnp.where(heads > 20.0, heads,
                   jnp.log1p(jnp.exp(jnp.minimum(heads, 20.0)))) + 1e-6
    lane32 = jax.lax.broadcasted_iota(jnp.int32, heads.shape, 1)
    head_out = jnp.where(lane32 < OUTPUT_DIM, heads, sp)           # [mean|std]

    # 8) store only the 44 useful lanes (lanes 44:127 stay unspecified)
    out_ref[:, 0:OUT_USED] = jnp.concatenate(
        [head_out, tscores, importance], axis=-1)


# =============================== parameters ================================

def init_params(key, regime_dim=REGIME_DIM, hidden_dim=HIDDEN_DIM,
                output_dim=OUTPUT_DIM):
    """Deterministic synthetic params (PyTorch-style uniform bounds).

    Weights are stored pre-transposed as (fan_in, fan_out); biases are 1-D.
    """
    keys = iter(jax.random.split(key, 40))

    def lin(fan_in, fan_out):
        bound = float(fan_in) ** -0.5
        w = jax.random.uniform(next(keys), (fan_in, fan_out), jnp.float32,
                               -bound, bound)
        bb = jax.random.uniform(next(keys), (fan_out,), jnp.float32,
                                -bound, bound)
        return w, bb

    p = {}
    p['imp_w1'], p['imp_b1'] = lin(regime_dim, regime_dim * 2)        # 8 -> 16
    p['imp_w2'], p['imp_b2'] = lin(regime_dim * 2, regime_dim)        # 16 -> 8
    p['outp_w'], p['outp_b'] = lin(regime_dim, regime_dim * 2)        # 8 -> 16

    p['tn_w1'], p['tn_b1'] = lin(regime_dim * 2, hidden_dim)          # 16 -> 32
    p['tn_w2'], p['tn_b2'] = lin(hidden_dim, hidden_dim // 2)         # 32 -> 16
    p['tn_w3'], p['tn_b3'] = lin(hidden_dim // 2, 4)                  # 16 -> 4
    p['fe_w1'], p['fe_b1'] = lin(regime_dim * 2 + 4, hidden_dim)      # 20 -> 32
    p['fe_w2'], p['fe_b2'] = lin(hidden_dim, 16)                      # 32 -> 16

    def lstm_layer(in_dim):
        bound = float(hidden_dim) ** -0.5
        w_ih = jax.random.uniform(next(keys), (in_dim, 4 * hidden_dim),
                                  jnp.float32, -bound, bound)
        w_hh = jax.random.uniform(next(keys), (hidden_dim, 4 * hidden_dim),
                                  jnp.float32, -bound, bound)
        b_ih = jax.random.uniform(next(keys), (4 * hidden_dim,),
                                  jnp.float32, -bound, bound)
        b_hh = jax.random.uniform(next(keys), (4 * hidden_dim,),
                                  jnp.float32, -bound, bound)
        return w_ih, w_hh, b_ih, b_hh

    p['w_ih0'], p['w_hh0'], p['b_ih0'], p['b_hh0'] = lstm_layer(regime_dim)
    p['w_ih1'], p['w_hh1'], p['b_ih1'], p['b_hh1'] = lstm_layer(hidden_dim)
    p['h0'] = jnp.zeros((2, hidden_dim), jnp.float32)   # nn.Parameter(zeros)
    p['c0'] = jnp.zeros((2, hidden_dim), jnp.float32)
    p['tp_w1'], p['tp_b1'] = lin(hidden_dim, hidden_dim)              # 32 -> 32
    p['tp_w2'], p['tp_b2'] = lin(hidden_dim, 16)                      # 32 -> 16

    p['fu_w1'], p['fu_b1'] = lin(48, hidden_dim * 2)                  # 48 -> 64
    p['ln1_g'] = jnp.ones((hidden_dim * 2,), jnp.float32)
    p['ln1_b'] = jnp.zeros((hidden_dim * 2,), jnp.float32)
    p['fu_w2'], p['fu_b2'] = lin(hidden_dim * 2, hidden_dim)          # 64 -> 32
    p['ln2_g'] = jnp.ones((hidden_dim,), jnp.float32)
    p['ln2_b'] = jnp.zeros((hidden_dim,), jnp.float32)

    p['mean_w'], p['mean_b'] = lin(hidden_dim, output_dim)            # 32 -> 16
    p['std_w'], p['std_b'] = lin(hidden_dim, output_dim)              # 32 -> 16
    return p


def pack_params(p):
    """Pack raw params (done once) into the kernel slabs + temporal-path dict.

    Ordering notes (must match the PyTorch module):
      tn_w1 / fe_w1 rows split as [prev(0:8) | cur(8:16) | tscores(16:20)],
      fu_w1 input rows ordered [attn(0:16) | trans(16:32) | temporal(32:48)].
    """
    f32 = jnp.float32

    # ---- batched-path weight slab (bf16 matmul RHS, dense 128 lanes) ----
    W = jnp.zeros((W_ROWS, SLAB_W), f32)

    def put(slab, r, c, mat):
        return slab.at[r:r + mat.shape[0], c:c + mat.shape[1]].set(mat)

    # x @ [imp_w1 | tn_w1(cur) | fe_w1(cur)]
    w_x = jnp.concatenate([p['imp_w1'], p['tn_w1'][8:16], p['fe_w1'][8:16]], 1)
    W = put(W, RW_X, 0, w_x)                                   # [8, 80]
    # block-diag imp_w2 (+) tn_w2  -> LHS [relu(imp_pre)|t1], out [imp|t2_pre]
    W = put(W, RW_A, 0, p['imp_w2'])                           # rows 0:16
    W = put(W, RW_A + 16, 8, p['tn_w2'])                       # rows 16:48
    # block-diag outp_w (+) tn_w3  -> LHS [weighted|t2], out [attn|tscores|0]
    W = put(W, RW_B, 0, p['outp_w'])                           # rows 0:8
    W = put(W, RW_B + 8, 16, p['tn_w3'])                       # rows 8:24
    # tscores @ fe_w1(score rows), placed so output lands on lanes 48:80
    W = put(W, RW_C + 16, 48, p['fe_w1'][16:20])               # [24, 80]
    # fe_w2 with 48 leading zero rows (LHS is the full 80-lane f_act)
    W = put(W, RW_FE2 + 48, 0, p['fe_w2'])                     # [80, 16]
    W = put(W, RW_FU1, 0, p['fu_w1'])                          # [48, 64]
    W = put(W, RW_FU2, 0, p['fu_w2'])                          # [64, 32]
    W = put(W, RW_HEAD, 0, jnp.concatenate([p['mean_w'], p['std_w']], 1))
    W = W.astype(jnp.bfloat16)

    # ---- bias slab (f32) ----
    Bm = jnp.zeros((B_ROWS, SLAB_W), f32)

    def putb(slab, row, vec):
        return slab.at[row, 0:vec.shape[0]].set(vec)

    Bm = putb(Bm, BR_A, jnp.concatenate([p['imp_b2'], p['tn_b2']]))
    Bm = putb(Bm, BR_B, jnp.concatenate([p['outp_b'], p['tn_b3']]))
    Bm = putb(Bm, BR_FE2, p['fe_b2'])
    Bm = putb(Bm, BR_FU1, p['fu_b1'])
    Bm = putb(Bm, BR_LN1G, p['ln1_g'])
    Bm = putb(Bm, BR_LN1B, p['ln1_b'])
    Bm = putb(Bm, BR_FU2, p['fu_b2'])
    Bm = putb(Bm, BR_LN2G, p['ln2_g'])
    Bm = putb(Bm, BR_LN2B, p['ln2_b'])
    Bm = putb(Bm, BR_HEAD, jnp.concatenate([p['mean_b'], p['std_b']]))

    # ---- per-call-constant (hoisted) temporal/history path params (f32) ----
    # Fold the batch-independent h0 @ w_hh terms into the LSTM gate biases.
    temporal = dict(
        base_xbias=jnp.concatenate([p['imp_b1'], p['tn_b1'], p['fe_b1']]),
        w_hist=jnp.concatenate(
            [p['w_ih0'], p['tn_w1'][0:8], p['fe_w1'][0:8]], axis=1),   # [8,192]
        b_hist=jnp.concatenate(
            [p['b_ih0'] + p['b_hh0'] + p['h0'][0] @ p['w_hh0'],
             jnp.zeros((64,), f32)]),
        c0_l0=p['c0'][0], c0_l1=p['c0'][1],
        w_ih1=p['w_ih1'],
        b1_eff=p['b_ih1'] + p['b_hh1'] + p['h0'][1] @ p['w_hh1'],
        tp_w1=p['tp_w1'], tp_b1=p['tp_b1'],
        tp_w2=p['tp_w2'], tp_b2=p['tp_b2'],
    )
    return {'w_slab': W, 'b_slab': Bm, 'temporal': temporal}


# ================================ wrapper ===================================

def _round_up(x, m):
    return ((x + m - 1) // m) * m


def _pick_batch_tile(batch, max_tile=2048):
    """>=2 (even) grid steps whenever batch>=16 so v7x megacore can shard;
    tile is a multiple of 8 and capped at `max_tile` rows."""
    if batch < 16:
        return _round_up(max(batch, 1), 8)
    steps = max(2, -(-batch // max_tile))
    steps = _round_up(steps, 2)                    # balance the 2 TCs on v7x
    return min(max_tile, _round_up(-(-batch // steps), 8))


def _temporal_constants(packed, regime_vector):
    """Per-call constants (depend only on regime_vector[0] + weights): tiny
    wrapper-side XLA matmuls replacing the hoisted history/LSTM/temporal path."""
    t = packed['temporal']
    f32 = jnp.float32
    hist = regime_vector[0:1, :].astype(f32)                      # [1, 8]

    # hist @ [w_ih0 | tn_w1(prev) | fe_w1(prev)] (+ folded LSTM layer-0 bias)
    h_out = hist @ t['w_hist'] + t['b_hist']                      # [1, 192]
    gates0 = h_out[:, 0:128]
    h_t1 = h_out[:, 128:160]
    h_fh = h_out[:, 160:192]

    def lstm_step(gates, c0):                      # PyTorch gate order i,f,g,o
        i_g = jax.nn.sigmoid(gates[:, 0:32])
        f_g = jax.nn.sigmoid(gates[:, 32:64])
        g_g = jnp.tanh(gates[:, 64:96])
        o_g = jax.nn.sigmoid(gates[:, 96:128])
        c_new = f_g * c0 + i_g * g_g
        return o_g * jnp.tanh(c_new)

    h1 = lstm_step(gates0, t['c0_l0'])                            # [1, 32]
    gates1 = h1 @ t['w_ih1'] + t['b1_eff']
    h2 = lstm_step(gates1, t['c0_l1'])                            # [1, 32]
    tp = jnp.maximum(h2 @ t['tp_w1'] + t['tp_b1'], 0.0)
    temporal_feat = tp @ t['tp_w2'] + t['tp_b2']                  # [1, 16]

    # First-layer bias with history contributions folded in (80 lanes).
    xbias = t['base_xbias'] + jnp.concatenate(
        [jnp.zeros((16,), f32), h_t1[0], h_fh[0]])

    dyn = jnp.zeros((8, SLAB_W), f32)
    dyn = dyn.at[0, 0:80].set(xbias)
    dyn = dyn.at[1, 0:16].set(temporal_feat[0])
    return dyn


def regime_embedder_forward(regime_vector, packed, ema_alpha=0.01,
                            batch_tile=None):
    """Pallas-backed RegimeEmbedder.forward (eval mode)."""
    batch = regime_vector.shape[0]
    tb = _round_up(batch_tile, 8) if batch_tile else _pick_batch_tile(batch)
    padded = _round_up(batch, tb)
    x = regime_vector.astype(jnp.float32)
    if padded != batch:                            # pad; padded rows are junk
        x = jnp.concatenate(
            [x, jnp.zeros((padded - batch, REGIME_DIM), jnp.float32)], axis=0)
    grid = (padded // tb,)

    dyn = _temporal_constants(packed, regime_vector)

    out = pl.pallas_call(
        _regime_embedder_kernel,
        out_shape=jax.ShapeDtypeStruct((padded, OUT_W), jnp.float32),
        grid=grid,
        in_specs=[
            pl.BlockSpec((tb, REGIME_DIM), lambda i: (i, 0)),    # x (tiled)
            pl.BlockSpec((8, SLAB_W), lambda i: (0, 0)),         # per-call dyn
            pl.BlockSpec((W_ROWS, SLAB_W), lambda i: (0, 0)),    # weight slab
            pl.BlockSpec((B_ROWS, SLAB_W), lambda i: (0, 0)),    # bias slab
        ],
        out_specs=pl.BlockSpec((tb, OUT_W), lambda i: (i, 0)),
        compiler_params=pltpu.CompilerParams(
            dimension_semantics=("parallel",),
            vmem_limit_bytes=32 * 1024 * 1024),
    )(x, dyn, packed['w_slab'], packed['b_slab'])

    out = out[:batch]                              # drop padded rows
    mean = out[:, 0:OUTPUT_DIM]
    std = out[:, OUTPUT_DIM:2 * OUTPUT_DIM]
    tsc3 = out[:, 2 * OUTPUT_DIM + 3]              # transition_scores[:, 3]
    importance = out[:, 2 * OUTPUT_DIM + 4:OUT_USED]

    # Non-hot-path scalars / EMA state (glue, matches the PyTorch wrapper;
    # EMA uses importance of the first batch element, as in the reference).
    transition_score = jax.nn.sigmoid(tsc3).mean()
    ema0 = jnp.ones((REGIME_DIM,), jnp.float32) / REGIME_DIM
    importance_ema = (1.0 - ema_alpha) * ema0 + ema_alpha * importance[0]

    return {
        "mean": mean,
        "std": std,
        "transition_score": transition_score,
        "component_importance_ema": importance_ema,
    }


# ====================== pure-JAX reference (for checking) ===================

def _reference_forward(p, regime_vector):
    """Plain-JAX eval-mode forward mirroring the PyTorch module."""
    x = regime_vector
    B = x.shape[0]
    relu = lambda a: jnp.maximum(a, 0.0)
    sig = jax.nn.sigmoid

    importance = sig(relu(x @ p['imp_w1'] + p['imp_b1']) @ p['imp_w2']
                     + p['imp_b2'])
    weighted = x * importance
    attn_feat = weighted @ p['outp_w'] + p['outp_b']

    prev = jnp.broadcast_to(x[0:1], x.shape)       # buffered regime_vector[0]
    pair = jnp.concatenate([prev, x], -1)
    t1 = relu(pair @ p['tn_w1'] + p['tn_b1'])
    t2 = relu(t1 @ p['tn_w2'] + p['tn_b2'])
    tsc = t2 @ p['tn_w3'] + p['tn_b3']
    fh = relu(jnp.concatenate([pair, tsc], -1) @ p['fe_w1'] + p['fe_b1'])
    trans_feat = fh @ p['fe_w2'] + p['fe_b2']

    def lstm_cell(inp, h, c, w_ih, w_hh, b_ih, b_hh):
        gates = inp @ w_ih + h @ w_hh + b_ih + b_hh
        i, f, g, o = jnp.split(gates, 4, axis=-1)
        c = sig(f) * c + sig(i) * jnp.tanh(g)
        return sig(o) * jnp.tanh(c)

    seq0 = x[0:1]
    h1 = lstm_cell(seq0, p['h0'][0:1], p['c0'][0:1],
                   p['w_ih0'], p['w_hh0'], p['b_ih0'], p['b_hh0'])
    h2 = lstm_cell(h1, p['h0'][1:2], p['c0'][1:2],
                   p['w_ih1'], p['w_hh1'], p['b_ih1'], p['b_hh1'])
    tp = relu(h2 @ p['tp_w1'] + p['tp_b1'])
    temporal = jnp.broadcast_to(tp @ p['tp_w2'] + p['tp_b2'], (B, 16))

    def ln(z, g, b):
        mu = z.mean(-1, keepdims=True)
        v = ((z - mu) ** 2).mean(-1, keepdims=True)
        return (z - mu) / jnp.sqrt(v + 1e-5) * g + b

    combined = jnp.concatenate([attn_feat, trans_feat, temporal], -1)
    a1 = relu(ln(combined @ p['fu_w1'] + p['fu_b1'], p['ln1_g'], p['ln1_b']))
    fused = relu(ln(a1 @ p['fu_w2'] + p['fu_b2'], p['ln2_g'], p['ln2_b']))
    mean = fused @ p['mean_w'] + p['mean_b']
    std = jax.nn.softplus(fused @ p['std_w'] + p['std_b']) + 1e-6
    return mean, std


# ================================== main ====================================

if __name__ == "__main__":
    key = jax.random.PRNGKey(0)
    k_params, k_x = jax.random.split(key)

    raw_params = init_params(k_params)
    packed = pack_params(raw_params)

    # Small case: batch=4 (single grid step, padded 4 -> 8 rows).
    batch = 4
    regime_vector = jax.random.normal(k_x, (batch, REGIME_DIM), jnp.float32)
    out = regime_embedder_forward(regime_vector, packed)
    jax.block_until_ready(out["mean"])
    jax.block_until_ready(out["std"])

    assert out["mean"].shape == (batch, OUTPUT_DIM)
    assert out["std"].shape == (batch, OUTPUT_DIM)
    assert bool(jnp.all(out["std"] > 0.0))
    assert bool(jnp.all(jnp.isfinite(out["mean"])))

    ref_mean, ref_std = _reference_forward(raw_params, regime_vector)
    assert bool(jnp.allclose(out["mean"], ref_mean, atol=0.15, rtol=0.1))
    assert bool(jnp.allclose(out["std"], ref_std, atol=0.15, rtol=0.1))

    # Second case exercising the multi-step (parallel) grid + batch padding.
    batch2 = 20
    rv2 = jax.random.normal(jax.random.PRNGKey(7), (batch2, REGIME_DIM),
                            jnp.float32)
    out2 = regime_embedder_forward(rv2, packed)
    jax.block_until_ready(out2["mean"])
    ref2_mean, ref2_std = _reference_forward(raw_params, rv2)
    assert out2["mean"].shape == (batch2, OUTPUT_DIM)
    assert bool(jnp.allclose(out2["mean"], ref2_mean, atol=0.15, rtol=0.1))
    assert bool(jnp.allclose(out2["std"], ref2_std, atol=0.15, rtol=0.1))

    print("KERNEL_OK")
</pallas_src>

<mosaic_0001>
module attributes {stable_mosaic.version = 11 : i64} {
  func.func @_regime_embedder_kernel(%arg0: i32, %arg1: memref<8x8xf32, #tpu.memory_space<vmem>>, %arg2: memref<8x128xf32, #tpu.memory_space<vmem>>, %arg3: memref<328x128xbf16, #tpu.memory_space<vmem>>, %arg4: memref<16x128xf32, #tpu.memory_space<vmem>>, %arg5: memref<8x128xf32, #tpu.memory_space<vmem>>) attributes {dimension_semantics = [#tpu.dimension_semantics<parallel>], iteration_bounds = array<i64: 1>, scalar_prefetch = 0 : i64, scratch_operands = 0 : i64, tpu.core_type = #tpu.core_type<tc>, window_params = [{transform_indices = @transform_0, window_bounds = array<i64: 8, 8>}, {pipeline_mode = #tpu.pipeline_mode<synchronous>, transform_indices = @transform_1, window_bounds = array<i64: 8, 128>}, {pipeline_mode = #tpu.pipeline_mode<synchronous>, transform_indices = @transform_2, window_bounds = array<i64: 328, 128>}, {pipeline_mode = #tpu.pipeline_mode<synchronous>, transform_indices = @transform_3, window_bounds = array<i64: 16, 128>}, {transform_indices = @transform_4, window_bounds = array<i64: 8, 128>}]} {
    %c0 = arith.constant 0 : index
    %c0_0 = arith.constant 0 : index
    %0 = vector.load %arg1[%c0, %c0_0] : memref<8x8xf32, #tpu.memory_space<vmem>>, vector<8x8xf32>
    %c0_1 = arith.constant 0 : index
    %c0_2 = arith.constant 0 : index
    %1 = vector.load %arg2[%c0_1, %c0_2] : memref<8x128xf32, #tpu.memory_space<vmem>>, vector<1x80xf32>
    %c1 = arith.constant 1 : index
    %c0_3 = arith.constant 0 : index
    %2 = vector.load %arg2[%c1, %c0_3] : memref<8x128xf32, #tpu.memory_space<vmem>>, vector<1x16xf32>
    %c0_4 = arith.constant 0 : index
    %c0_5 = arith.constant 0 : index
    %3 = vector.load %arg3[%c0_4, %c0_5] : memref<328x128xbf16, #tpu.memory_space<vmem>>, vector<8x80xbf16>
    %4 = arith.truncf %0 : vector<8x8xf32> to vector<8x8xbf16>
    %cst = arith.constant dense<0.000000e+00> : vector<8x80xf32>
    %5 = tpu.matmul %4, %3, %cst {dimension_numbers = #tpu.dot_dimension_numbers<[1], [0], [0], [1], [0, 0, 1, 1], [], []>} : vector<8x8xbf16>, vector<8x80xbf16>, vector<8x80xf32> -> vector<8x80xf32>
    %6 = vector.broadcast %1 : vector<1x80xf32> to vector<8x80xf32>
    %7 = arith.addf %5, %6 : vector<8x80xf32>
    %8 = vector.extract_strided_slice %7 {offsets = [0, 0], sizes = [8, 48], strides = [1, 1]} : vector<8x80xf32> to vector<8x48xf32>
    %cst_6 = arith.constant 0.000000e+00 : f32
    %9 = vector.broadcast %cst_6 : f32 to vector<8x48xf32>
    %10 = arith.maximumf %8, %9 : vector<8x48xf32>
    %c8 = arith.constant 8 : index
    %c0_7 = arith.constant 0 : index
    %11 = vector.load %arg3[%c8, %c0_7] : memref<328x128xbf16, #tpu.memory_space<vmem>>, vector<48x24xbf16>
    %12 = arith.truncf %10 : vector<8x48xf32> to vector<8x48xbf16>
    %cst_8 = arith.constant dense<0.000000e+00> : vector<8x24xf32>
    %13 = tpu.matmul %12, %11, %cst_8 {dimension_numbers = #tpu.dot_dimension_numbers<[1], [0], [0], [1], [0, 0, 1, 1], [], []>} : vector<8x48xbf16>, vector<48x24xbf16>, vector<8x24xf32> -> vector<8x24xf32>
    %c0_9 = arith.constant 0 : index
    %c0_10 = arith.constant 0 : index
    %14 = vector.load %arg4[%c0_9, %c0_10] : memref<16x128xf32, #tpu.memory_space<vmem>>, vector<1x24xf32>
    %15 = vector.broadcast %14 : vector<1x24xf32> to vector<8x24xf32>
    %16 = arith.addf %13, %15 : vector<8x24xf32>
    %17 = arith.negf %16 : vector<8x24xf32>
    %18 = math.exp %17 : vector<8x24xf32>
    %cst_11 = arith.constant 1.000000e+00 : f32
    %19 = vector.broadcast %cst_11 : f32 to vector<8x24xf32>
    %20 = arith.addf %19, %18 : vector<8x24xf32>
    %21 = arith.divf %19, %20 : vector<8x24xf32>
    %cst_12 = arith.constant 0.000000e+00 : f32
    %22 = vector.broadcast %cst_12 : f32 to vector<8x24xf32>
    %23 = arith.maximumf %16, %22 : vector<8x24xf32>
    %24 = tpu.iota {dimensions = array<i32: 1>} : vector<8x24xi32>
    %cst_13 = arith.constant 0.000000e+00 : f32
    %25 = vector.broadcast %cst_13 : f32 to vector<8x16xf32>
    %26 = tpu.concatenate %0, %25 in 1 : vector<8x8xf32>, vector<8x16xf32> -> vector<8x24xf32>
    %27 = vector.extract_strided_slice %21 {offsets = [0, 0], sizes = [8, 8], strides = [1, 1]} : vector<8x24xf32> to vector<8x8xf32>
    %c8_i32 = arith.constant 8 : i32
    %28 = vector.broadcast %c8_i32 : i32 to vector<8x24xi32>
    %29 = arith.cmpi slt, %24, %28 : vector<8x24xi32>
    %30 = arith.mulf %26, %21 : vector<8x24xf32>
    %31 = arith.select %29, %30, %23 : vector<8x24xi1>, vector<8x24xf32>
    %c56 = arith.constant 56 : index
    %c0_14 = arith.constant 0 : index
    %32 = vector.load %arg3[%c56, %c0_14] : memref<328x128xbf16, #tpu.memory_space<vmem>>, vector<24x24xbf16>
    %33 = arith.truncf %31 : vector<8x24xf32> to vector<8x24xbf16>
    %cst_15 = arith.constant dense<0.000000e+00> : vector<8x24xf32>
    %34 = tpu.matmul %33, %32, %cst_15 {dimension_numbers = #tpu.dot_dimension_numbers<[1], [0], [0], [1], [0, 0, 1, 1], [], []>} : vector<8x24xbf16>, vector<24x24xbf16>, vector<8x24xf32> -> vector<8x24xf32>
    %c1_16 = arith.constant 1 : index
    %c0_17 = arith.constant 0 : index
    %35 = vector.load %arg4[%c1_16, %c0_17] : memref<16x128xf32, #tpu.memory_space<vmem>>, vector<1x24xf32>
    %36 = vector.broadcast %35 : vector<1x24xf32> to vector<8x24xf32>
    %37 = arith.addf %34, %36 : vector<8x24xf32>
    %38 = vector.extract_strided_slice %37 {offsets = [0, 0], sizes = [8, 16], strides = [1, 1]} : vector<8x24xf32> to vector<8x16xf32>
    %39 = vector.extract_strided_slice %37 {offsets = [0, 16], sizes = [8, 4], strides = [1, 1]} : vector<8x24xf32> to vector<8x4xf32>
    %c80 = arith.constant 80 : index
    %c0_18 = arith.constant 0 : index
    %40 = vector.load %arg3[%c80, %c0_18] : memref<328x128xbf16, #tpu.memory_space<vmem>>, vector<24x80xbf16>
    %41 = arith.truncf %37 : vector<8x24xf32> to vector<8x24xbf16>
    %cst_19 = arith.constant dense<0.000000e+00> : vector<8x80xf32>
    %42 = tpu.matmul %41, %40, %cst_19 {dimension_numbers = #tpu.dot_dimension_numbers<[1], [0], [0], [1], [0, 0, 1, 1], [], []>} : vector<8x24xbf16>, vector<24x80xbf16>, vector<8x80xf32> -> vector<8x80xf32>
    %43 = arith.addf %7, %42 : vector<8x80xf32>
    %cst_20 = arith.constant 0.000000e+00 : f32
    %44 = vector.broadcast %cst_20 : f32 to vector<8x80xf32>
    %45 = arith.maximumf %43, %44 : vector<8x80xf32>
    %c104 = arith.constant 104 : index
    %c0_21 = arith.constant 0 : index
    %46 = vector.load %arg3[%c104, %c0_21] : memref<328x128xbf16, #tpu.memory_space<vmem>>, vector<80x16xbf16>
    %47 = arith.truncf %45 : vector<8x80xf32> to vector<8x80xbf16>
    %cst_22 = arith.constant dense<0.000000e+00> : vector<8x16xf32>
    %48 = tpu.matmul %47, %46, %cst_22 {dimension_numbers = #tpu.dot_dimension_numbers<[1], [0], [0], [1], [0, 0, 1, 1], [], []>} : vector<8x80xbf16>, vector<80x16xbf16>, vector<8x16xf32> -> vector<8x16xf32>
    %c2 = arith.constant 2 : index
    %c0_23 = arith.constant 0 : index
    %49 = vector.load %arg4[%c2, %c0_23] : memref<16x128xf32, #tpu.memory_space<vmem>>, vector<1x16xf32>
    %50 = vector.broadcast %49 : vector<1x16xf32> to vector<8x16xf32>
    %51 = arith.addf %48, %50 : vector<8x16xf32>
    %52 = vector.shape_cast %2 : vector<1x16xf32> to vector<1x16xf32>
    %53 = vector.broadcast %52 : vector<1x16xf32> to vector<8x16xf32>
    %54 = tpu.concatenate %38, %51, %53 in 1 : vector<8x16xf32>, vector<8x16xf32>, vector<8x16xf32> -> vector<8x48xf32>
    %c184 = arith.constant 184 : index
    %c0_24 = arith.constant 0 : index
    %55 = vector.load %arg3[%c184, %c0_24] : memref<328x128xbf16, #tpu.memory_space<vmem>>, vector<48x64xbf16>
    %56 = arith.truncf %54 : vector<8x48xf32> to vector<8x48xbf16>
    %cst_25 = arith.constant dense<0.000000e+00> : vector<8x64xf32>
    %57 = tpu.matmul %56, %55, %cst_25 {dimension_numbers = #tpu.dot_dimension_numbers<[1], [0], [0], [1], [0, 0, 1, 1], [], []>} : vector<8x48xbf16>, vector<48x64xbf16>, vector<8x64xf32> -> vector<8x64xf32>
    %c3 = arith.constant 3 : index
    %c0_26 = arith.constant 0 : index
    %58 = vector.load %arg4[%c3, %c0_26] : memref<16x128xf32, #tpu.memory_space<vmem>>, vector<1x64xf32>
    %59 = vector.broadcast %58 : vector<1x64xf32> to vector<8x64xf32>
    %60 = arith.addf %57, %59 : vector<8x64xf32>
    %c4 = arith.constant 4 : index
    %c0_27 = arith.constant 0 : index
    %61 = vector.load %arg4[%c4, %c0_27] : memref<16x128xf32, #tpu.memory_space<vmem>>, vector<1x64xf32>
    %c5 = arith.constant 5 : index
    %c0_28 = arith.constant 0 : index
    %62 = vector.load %arg4[%c5, %c0_28] : memref<16x128xf32, #tpu.memory_space<vmem>>, vector<1x64xf32>
    %cst_29 = arith.constant dense<0.000000e+00> : vector<8xf32>
    %63 = vector.multi_reduction <add>, %60, %cst_29 [1] : vector<8x64xf32> to vector<8xf32>
    %64 = vector.shape_cast %63 : vector<8xf32> to vector<8x1xf32>
    %cst_30 = arith.constant 6.400000e+01 : f32
    %65 = vector.broadcast %cst_30 : f32 to vector<8x1xf32>
    %66 = arith.divf %64, %65 : vector<8x1xf32>
    %67 = vector.broadcast %66 : vector<8x1xf32> to vector<8x64xf32>
    %68 = arith.subf %60, %67 : vector<8x64xf32>
    %69 = vector.broadcast %66 : vector<8x1xf32> to vector<8x64xf32>
    %70 = arith.subf %60, %69 : vector<8x64xf32>
    %71 = arith.mulf %68, %70 : vector<8x64xf32>
    %cst_31 = arith.constant dense<0.000000e+00> : vector<8xf32>
    %72 = vector.multi_reduction <add>, %71, %cst_31 [1] : vector<8x64xf32> to vector<8xf32>
    %73 = vector.shape_cast %72 : vector<8xf32> to vector<8x1xf32>
    %cst_32 = arith.constant 6.400000e+01 : f32
    %74 = vector.broadcast %cst_32 : f32 to vector<8x1xf32>
    %75 = arith.divf %73, %74 : vector<8x1xf32>
    %76 = vector.broadcast %66 : vector<8x1xf32> to vector<8x64xf32>
    %77 = arith.subf %60, %76 : vector<8x64xf32>
    %cst_33 = arith.constant 9.99999974E-6 : f32
    %78 = vector.broadcast %cst_33 : f32 to vector<8x1xf32>
    %79 = arith.addf %75, %78 : vector<8x1xf32>
    %80 = math.rsqrt %79 : vector<8x1xf32>
    %81 = vector.broadcast %80 : vector<8x1xf32> to vector<8x64xf32>
    %82 = arith.mulf %77, %81 : vector<8x64xf32>
    %83 = vector.broadcast %61 : vector<1x64xf32> to vector<8x64xf32>
    %84 = arith.mulf %82, %83 : vector<8x64xf32>
    %85 = vector.broadcast %62 : vector<1x64xf32> to vector<8x64xf32>
    %86 = arith.addf %84, %85 : vector<8x64xf32>
    %cst_34 = arith.constant 0.000000e+00 : f32
    %87 = vector.broadcast %cst_34 : f32 to vector<8x64xf32>
    %88 = arith.maximumf %86, %87 : vector<8x64xf32>
    %c232 = arith.constant 232 : index
    %c0_35 = arith.constant 0 : index
    %89 = vector.load %arg3[%c232, %c0_35] : memref<328x128xbf16, #tpu.memory_space<vmem>>, vector<64x32xbf16>
    %90 = arith.truncf %88 : vector<8x64xf32> to vector<8x64xbf16>
    %cst_36 = arith.constant dense<0.000000e+00> : vector<8x32xf32>
    %91 = tpu.matmul %90, %89, %cst_36 {dimension_numbers = #tpu.dot_dimension_numbers<[1], [0], [0], [1], [0, 0, 1, 1], [], []>} : vector<8x64xbf16>, vector<64x32xbf16>, vector<8x32xf32> -> vector<8x32xf32>
    %c6 = arith.constant 6 : index
    %c0_37 = arith.constant 0 : index
    %92 = vector.load %arg4[%c6, %c0_37] : memref<16x128xf32, #tpu.memory_space<vmem>>, vector<1x32xf32>
    %93 = vector.broadcast %92 : vector<1x32xf32> to vector<8x32xf32>
    %94 = arith.addf %91, %93 : vector<8x32xf32>
    %c7 = arith.constant 7 : index
    %c0_38 = arith.constant 0 : index
    %95 = vector.load %arg4[%c7, %c0_38] : memref<16x128xf32, #tpu.memory_space<vmem>>, vector<1x32xf32>
    %c8_39 = arith.constant 8 : index
    %c0_40 = arith.constant 0 : index
    %96 = vector.load %arg4[%c8_39, %c0_40] : memref<16x128xf32, #tpu.memory_space<vmem>>, vector<1x32xf32>
    %cst_41 = arith.constant dense<0.000000e+00> : vector<8xf32>
    %97 = vector.multi_reduction <add>, %94, %cst_41 [1] : vector<8x32xf32> to vector<8xf32>
    %98 = vector.shape_cast %97 : vector<8xf32> to vector<8x1xf32>
    %cst_42 = arith.constant 3.200000e+01 : f32
    %99 = vector.broadcast %cst_42 : f32 to vector<8x1xf32>
    %100 = arith.divf %98, %99 : vector<8x1xf32>
    %101 = vector.broadcast %100 : vector<8x1xf32> to vector<8x32xf32>
    %102 = arith.subf %94, %101 : vector<8x32xf32>
    %103 = vector.broadcast %100 : vector<8x1xf32> to vector<8x32xf32>
    %104 = arith.subf %94, %103 : vector<8x32xf32>
    %105 = arith.mulf %102, %104 : vector<8x32xf32>
    %cst_43 = arith.constant dense<0.000000e+00> : vector<8xf32>
    %106 = vector.multi_reduction <add>, %105, %cst_43 [1] : vector<8x32xf32> to vector<8xf32>
    %107 = vector.shape_cast %106 : vector<8xf32> to vector<8x1xf32>
    %cst_44 = arith.constant 3.200000e+01 : f32
    %108 = vector.broadcast %cst_44 : f32 to vector<8x1xf32>
    %109 = arith.divf %107, %108 : vector<8x1xf32>
    %110 = vector.broadcast %100 : vector<8x1xf32> to vector<8x32xf32>
    %111 = arith.subf %94, %110 : vector<8x32xf32>
    %cst_45 = arith.constant 9.99999974E-6 : f32
    %112 = vector.broadcast %cst_45 : f32 to vector<8x1xf32>
    %113 = arith.addf %109, %112 : vector<8x1xf32>
    %114 = math.rsqrt %113 : vector<8x1xf32>
    %115 = vector.broadcast %114 : vector<8x1xf32> to vector<8x32xf32>
    %116 = arith.mulf %111, %115 : vector<8x32xf32>
    %117 = vector.broadcast %95 : vector<1x32xf32> to vector<8x32xf32>
    %118 = arith.mulf %116, %117 : vector<8x32xf32>
    %119 = vector.broadcast %96 : vector<1x32xf32> to vector<8x32xf32>
    %120 = arith.addf %118, %119 : vector<8x32xf32>
    %cst_46 = arith.constant 0.000000e+00 : f32
    %121 = vector.broadcast %cst_46 : f32 to vector<8x32xf32>
    %122 = arith.maximumf %120, %121 : vector<8x32xf32>
    %c296 = arith.constant 296 : index
    %c0_47 = arith.constant 0 : index
    %123 = vector.load %arg3[%c296, %c0_47] : memref<328x128xbf16, #tpu.memory_space<vmem>>, vector<32x32xbf16>
    %124 = arith.truncf %122 : vector<8x32xf32> to vector<8x32xbf16>
    %cst_48 = arith.constant dense<0.000000e+00> : vector<8x32xf32>
    %125 = tpu.matmul %124, %123, %cst_48 {dimension_numbers = #tpu.dot_dimension_numbers<[1], [0], [0], [1], [0, 0, 1, 1], [], []>} : vector<8x32xbf16>, vector<32x32xbf16>, vector<8x32xf32> -> vector<8x32xf32>
    %c9 = arith.constant 9 : index
    %c0_49 = arith.constant 0 : index
    %126 = vector.load %arg4[%c9, %c0_49] : memref<16x128xf32, #tpu.memory_space<vmem>>, vector<1x32xf32>
    %127 = vector.broadcast %126 : vector<1x32xf32> to vector<8x32xf32>
    %128 = arith.addf %125, %127 : vector<8x32xf32>
    %cst_50 = arith.constant 2.000000e+01 : f32
    %129 = vector.broadcast %cst_50 : f32 to vector<8x32xf32>
    %130 = arith.cmpf ogt, %128, %129 : vector<8x32xf32>
    %cst_51 = arith.constant 2.000000e+01 : f32
    %131 = vector.broadcast %cst_51 : f32 to vector<8x32xf32>
    %132 = arith.minimumf %128, %131 : vector<8x32xf32>
    %133 = math.exp %132 : vector<8x32xf32>
    %134 = math.log1p %133 : vector<8x32xf32>
    %135 = arith.select %130, %128, %134 : vector<8x32xi1>, vector<8x32xf32>
    %cst_52 = arith.constant 9.99999997E-7 : f32
    %136 = vector.broadcast %cst_52 : f32 to vector<8x32xf32>
    %137 = arith.addf %135, %136 : vector<8x32xf32>
    %138 = tpu.iota {dimensions = array<i32: 1>} : vector<8x32xi32>
    %c16_i32 = arith.constant 16 : i32
    %139 = vector.broadcast %c16_i32 : i32 to vector<8x32xi32>
    %140 = arith.cmpi slt, %138, %139 : vector<8x32xi32>
    %141 = arith.select %140, %128, %137 : vector<8x32xi1>, vector<8x32xf32>
    %142 = tpu.concatenate %141, %39, %27 in 1 : vector<8x32xf32>, vector<8x4xf32>, vector<8x8xf32> -> vector<8x44xf32>
    %c0_53 = arith.constant 0 : index
    %c0_54 = arith.constant 0 : index
    %143 = vector.load %arg5[%c0_53, %c0_54] : memref<8x128xf32, #tpu.memory_space<vmem>>, vector<8x44xf32>
    tpu.vector_store %arg5[%c0_53, %c0_54], %142 {strides = array<i32>} : memref<8x128xf32, #tpu.memory_space<vmem>>, vector<8x44xf32>,
    return
  }
  func.func @transform_0(%arg0: i32) -> (i32, i32) {
    %c0_i32 = arith.constant 0 : i32
    %c0_i32_0 = arith.constant 0 : i32
    return %arg0, %c0_i32 : i32, i32
  }
  func.func @transform_1(%arg0: i32) -> (i32, i32) {
    %c0_i32 = arith.constant 0 : i32
    %c0_i32_0 = arith.constant 0 : i32
    %c0_i32_1 = arith.constant 0 : i32
    return %c0_i32, %c0_i32_0 : i32, i32
  }
  func.func @transform_2(%arg0: i32) -> (i32, i32) {
    %c0_i32 = arith.constant 0 : i32
    %c0_i32_0 = arith.constant 0 : i32
    %c0_i32_1 = arith.constant 0 : i32
    return %c0_i32, %c0_i32_0 : i32, i32
  }
  func.func @transform_3(%arg0: i32) -> (i32, i32) {
    %c0_i32 = arith.constant 0 : i32
    %c0_i32_0 = arith.constant 0 : i32
    %c0_i32_1 = arith.constant 0 : i32
    return %c0_i32, %c0_i32_0 : i32, i32
  }
  func.func @transform_4(%arg0: i32) -> (i32, i32) {
    %c0_i32 = arith.constant 0 : i32
    %c0_i32_0 = arith.constant 0 : i32
    return %arg0, %c0_i32 : i32, i32
  }
}

</mosaic_0001>

<bundles_post_ra>
// kernel: tpu_custom_call.1
= control target key start
LH: loop header
LB: loop body
LE: loop exit
PB: predicated region body
PF: predicated region fallthrough
CT: control target
= control target key end

     0   :  { %9 = vsyncpa [#allocation3], 0  ;;  %s1253_s0 = inlined_call_operand.hbm [shape: f32[8,8], index: 0, kind: input, shape index: {}]   ;;  %s1254_s1 = inlined_call_operand.hbm [shape: f32[8,128], index: 1, kind: input, shape index: {}]   ;;  %s1255_s2 = inlined_call_operand.hbm [shape: bf16[328,128], index: 2, kind: input, shape index: {}]   ;;  %s1256_s3 = inlined_call_operand.hbm [shape: f32[16,128], index: 3, kind: input, shape index: {}]   ;;  %s1257_s4 = inlined_call_operand.hbm [shape: f32[8,128], index: 4, kind: output, shape index: {}]  }
   0x1   :  { %10 = vsyncpa [#allocation6], 0 }
   0x2   :  { %11 = vsyncpa [#allocation9], 0 }
   0x3   :  { %12 = vsyncpa [#allocation4], 0  ;;  %s1081_s15 = smov [#allocation5]   ;;  %s1082_s17 = smov [#allocation2]  }
   0x4   :  { %s29_s16 = sshll.u32 %s1081_s15, 4  ;;  %s19_s18 = sshll.u32 %s1082_s17, 4  ;;  %s30_s16 = int_to_ptr.vmem [resolvable:$true] %s29_s16  ;;  %s20_s18 = int_to_ptr.vmem [resolvable:$true] %s19_s18 }
   0x5   :  { %s963_s21 = scalar_lea.hbm %s1254_s1, 128 }
   0x6   :  { %p964_p0 = scmp.ne.s32.totalorder %s1254_s1, %s963_s21  ;;  %p967_p1 = scmp.lt.u32.totalorder %s963_s21, %s1254_s1 }
   0x8   :  { %p969_p2 = pnand %p967_p1, %p964_p0 }
   0xa   :  { %972 = shalt.err (!%p969_p2)
}
   0xb   :  { %s973_s26 = scalar_lea.vmem %s30_s16, 128  ;;  %p978_p4 = scmp.lt.s32.totalorder %s30_s16, %s30_s16 }
   0xc   :  { %p974_p3 = scmp.ne.s32.totalorder %s30_s16, %s973_s26  ;;  %p979_p5 = scmp.lt.s32.totalorder %s973_s26, %s973_s26 }
   0xe   :  { %p980_p6 = por %p979_p5, %p978_p4 }
  0x10   :  { %p981_p7 = pnand %p980_p6, %p974_p3 }
  0x12   :  { %984 = shalt.err (!%p981_p7)
}
  0x13   :  { %32 = dma.hbm_to_vmem [thread:$0]  %s1254_s1, 128, %s30_s16, [#allocation6]  }
  0x14   :  { %s985_s5 = scalar_lea.hbm %s1253_s0, 128 }
  0x15   :  { %p986_p8 = scmp.ne.s32.totalorder %s1253_s0, %s985_s5  ;;  %p989_p9 = scmp.lt.u32.totalorder %s985_s5, %s1253_s0 }
  0x17   :  { %p991_p10 = pnand %p989_p9, %p986_p8 }
  0x19   :  { %994 = shalt.err (!%p991_p10)
}
  0x1a   :  { %s995_s10 = scalar_lea.vmem %s20_s18, 128  ;;  %p1000_p12 = scmp.lt.s32.totalorder %s20_s18, %s20_s18 }
  0x1b   :  { %p996_p11 = scmp.ne.s32.totalorder %s20_s18, %s995_s10  ;;  %p1001_p13 = scmp.lt.s32.totalorder %s995_s10, %s995_s10 }
  0x1d   :  { %p1002_p0 = por %p1001_p13, %p1000_p12 }
  0x1f   :  { %p1003_p1 = pnand %p1002_p0, %p996_p11 }
  0x21   :  { %1006 = shalt.err (!%p1003_p1)
}
  0x22   :  { %22 = dma.hbm_to_vmem [thread:$0]  %s1253_s0, 128, %s20_s18, [#allocation3]  }
  0x23   :  { %s1083_s12 = smov [#allocation7]   ;;  %s1007_s16 = scalar_lea.hbm %s1255_s2, 2624 }
  0x24   :  { %s38_s13 = sshll.u32 %s1083_s12, 4  ;;  %p1008_p2 = scmp.ne.s32.totalorder %s1255_s2, %s1007_s16  ;;  %s39_s13 = int_to_ptr.vmem [resolvable:$true] %s38_s13 }
  0x25   :  { %p1011_p3 = scmp.lt.u32.totalorder %s1007_s16, %s1255_s2 }
  0x27   :  { %p1013_p4 = pnand %p1011_p3, %p1008_p2 }
  0x29   :  { %1016 = shalt.err (!%p1013_p4)
}
  0x2a   :  { %s1017_s22 = scalar_lea.vmem %s39_s13, 2624  ;;  %p1022_p6 = scmp.lt.s32.totalorder %s39_s13, %s39_s13 }
  0x2b   :  { %p1018_p5 = scmp.ne.s32.totalorder %s39_s13, %s1017_s22  ;;  %p1023_p7 = scmp.lt.s32.totalorder %s1017_s22, %s1017_s22 }
  0x2d   :  { %p1024_p8 = por %p1023_p7, %p1022_p6 }
  0x2f   :  { %p1025_p9 = pnand %p1024_p8, %p1018_p5 }
  0x31   :  { %1028 = shalt.err (!%p1025_p9)
}
  0x32   :  { %s1084_s0 = smov 64   ;;  %s1085_s18 = smov 4  }
  0x33   :  { %44 = dma.hbm_to_vmem [thread:$0]  %s1255_s2, 2624, %s39_s13, [#allocation6], %s1084_s0, %s1084_s0, %s1085_s18  }
  0x34   :  { %s1086_s25 = smov [#allocation8]   ;;  %s1029_s29 = scalar_lea.hbm %s1256_s3, 256 }
  0x35   :  { %s50_s26 = sshll.u32 %s1086_s25, 4  ;;  %p1030_p10 = scmp.ne.s32.totalorder %s1256_s3, %s1029_s29  ;;  %s51_s26 = int_to_ptr.vmem [resolvable:$true] %s50_s26 }
  0x36   :  { %p1033_p11 = scmp.lt.u32.totalorder %s1029_s29, %s1256_s3 }
  0x38   :  { %p1035_p12 = pnand %p1033_p11, %p1030_p10 }
  0x3a   :  { %1038 = shalt.err (!%p1035_p12)
}
  0x3b   :  { %s1039_s8 = scalar_lea.vmem %s51_s26, 256  ;;  %p1044_p0 = scmp.lt.s32.totalorder %s51_s26, %s51_s26 }
  0x3c   :  { %p1040_p13 = scmp.ne.s32.totalorder %s51_s26, %s1039_s8  ;;  %p1045_p1 = scmp.lt.s32.totalorder %s1039_s8, %s1039_s8 }
  0x3e   :  { %p1046_p2 = por %p1045_p1, %p1044_p0 }
  0x40   :  { %p1047_p3 = pnand %p1046_p2, %p1040_p13 }
  0x42   :  { %1050 = shalt.err (!%p1047_p3)
}
  0x43   :  { %s1087_s2 = smov 128   ;;  %s1088_s9 = smov 8  }
  0x44   :  { %56 = dma.hbm_to_vmem [thread:$0]  %s1256_s3, 256, %s51_s26, [#allocation9], %s1087_s2, %s1087_s2, %s1088_s9  }
  0x45   :  { %1073 = dma.done.wait [#allocation3], 128  }
  0x46   :  { %1074 = vsyncadd [#allocation3], 4294967168 }
  0x47   :  { %1075 = dma.done.wait [#allocation6], 2752  }
  0x48   :  { %1076 = vsyncadd [#allocation6], 4294964544 }
  0x49   :  { %1077 = dma.done.wait [#allocation9], 256  }
  0x4a   :  { %1078 = vsyncadd [#allocation9], 4294967040  ;;  %v1089_v0 = vmov 0.0   ;;  %vm1090_vm0 = vmmov 0   ;;  %vm83_vm1 = vcmask 1043456   ;;  %v70_v2 = vld [vmem:[#allocation2] sm:$0xff]  ;;  %v209_v29 = vlaneseq }
  0x4b   :  { %840 = vmatprep.subr.bf16.mxu1 %v1089_v0  ;;  %842 = vmatprep.mubr.msk.bf16.mxu1 %vm1090_vm0, %v1089_v0  ;;  %v73_v1 = vld [vmem:[#allocation7] sm:$0xf]  ;;  %vm79_vm2 = vcmask 64512   ;;  %v74_v4 = vpack.c.bf16 %v70_v2, %v70_v2  ;;  %v930_v6 = vld [vmem:[#allocation7 + $0x4] sm:$0xff]   ;;  %v931_v7 = vld [vmem:[#allocation7 + $0xc] sm:$0xff]   ;;  %vm158_vm3 = vcmask 392192  }
  0x4c   :  { %856 = vmatprep.subr.bf16.mxu0 %v1089_v0  ;;  %860 = vmatprep.mubr.msk.bf16.mxu0 %vm1090_vm0, %v1089_v0  ;;  %v85_v3 = vsel %vm83_vm1, %v73_v1, 0  ;;  %v211_v5 = vsel %vm79_vm2, %v70_v2, 0.0  ;;  %v932_v8 = vld [vmem:[#allocation7 + $0x14] sm:$0xff]   ;;  %v933_v17 = vld [vmem:[#allocation7 + $0x1c] sm:$0xff]   ;;  %v934_v18 = vld [vmem:[#allocation7 + $0x24] ss:$0 sps:$4 sm:$0xff]  }
  0x4d   :  { %841 = vmatpush3.bf16.msra.mxu1 %v85_v3  ;;  %v768_v9 = vld [vmem:[#allocation5] ss:$0 sm:$0xff]  ;;  %857 = vmatpush3.bf16.msra.mxu0 %v933_v17  ;;  %v238_v19 = vsel %vm83_vm1, %v934_v18, 0  ;;  %v770_v20 = vld [vmem:[#allocation8] ss:$0 sm:$0xff]  ;;  %v1190_v30 = vand.u32 127, %v209_v29 }
  0x4e   :  { %846 = vmatprep.subr.bf16.mxu1 %v1089_v0  ;;  %858 = vmatprep.subr.bf16.mxu0 %v1089_v0  ;;  %vm233_vm5 = vcmask 195584   ;;  %v935_v35 = vld [vmem:[#allocation7 + $0x28] sm:$0xff]   ;;  %v936_v37 = vld [vmem:[#allocation7 + $0x30] ss:$0 sps:$4 sm:$0xff]   ;;  %v937_v39 = vld [vmem:[#allocation7 + $0x34] sm:$0xff]   ;;  %vm387_vm6 = vcmask 654336  }
  0x4f   :  { %vm212_vm4 = vcmp.lt.s32.totalorder %v1190_v30, 8  ;;  %v297_v38 = vsel %vm83_vm1, %v936_v37, 0  ;;  %v938_v40 = vld [vmem:[#allocation7 + $0x3c] sm:$0xff]   ;;  %v939_v41 = vld [vmem:[#allocation7 + $0x44] sm:$0xff]   ;;  %v940_v49 = vld [vmem:[#allocation7 + $0x4c] sm:$0xff]   ;;  %s1091_s3 = smov 16  }
  0x50   :  { %843 = vmatmul.mubr.msk.bf16.vlgmr.msra.gmra.mrb[0].mxu1 %vm79_vm2, %v74_v4  ;;  %v776_v42 = vld [vmem:[#allocation8 + $0x1] ss:$0 sm:$0xff]  ;;  %v941_v50 = vld [vmem:[#allocation7 + $0x54] sm:$0xff]   ;;  %v942_v58 = vld [vmem:[#allocation7 + $0x5c] sm:$0xff]   ;;  %s1092_s11 = smov 32   ;;  %vm443_vm7 = vcmask 130048  }
  0x51   :  { %847 = vmatpush3.bf16.msra.mxu1 %v930_v6  ;;  %852 = vmatprep.mubr.msk.bf16.mxu1 %vm1090_vm0, %v1089_v0  ;;  %v943_v59 = vld [vmem:[#allocation7 + $0x64] sm:$0xff]   ;;  %v944_v60 = vld [vmem:[#allocation7 + $0x6c] sm:$0xff]   ;;  %v790_v4 = vld [vmem:[#allocation5 + $0x1] ss:$0 sm:$0xff]  ;;  %vm445_vm8 = vcmask 261120   ;;  %vm522_vm9 = vcmask 523264  }
  0x52   :  { %848 = vmatprep.subr.bf16.mxu1 %v1089_v0  ;;  %859 = vmatpush3.bf16.msra.mxu0 %v238_v19  ;;  %v783_v61 = vld [vmem:[#allocation8 + $0x2] ss:$0 sm:$0xff]  ;;  %s1093_s12 = smov 36   ;;  %vm736_vm12 = vcmp.lt.s32.totalorder %v1190_v30, 16  ;;  %s1094_s13 = smov [#allocation10]   ;;  %vm747_vm13 = vcmask 293888  }
  0x53   :  { %864 = vmatprep.subr.bf16.mxu0 %v1089_v0  ;;  %s757_s14 = sshll.u32 %s1094_s13, 4  ;;  %vm749_vm14 = vcmask 359424   ;;  %s758_s14 = int_to_ptr.vmem [resolvable:$true] %s757_s14 }
  0x54   :  { %s1051_s15 = scalar_lea.vmem %s758_s14, 128  ;;  %p1056_p5 = scmp.lt.s32.totalorder %s758_s14, %s758_s14 }
  0x55   :  { %849 = vmatpush3.bf16.msra.mxu1 %v931_v7  ;;  %p1052_p4 = scmp.ne.s32.totalorder %s758_s14, %s1051_s15  ;;  %p1057_p6 = scmp.lt.s32.totalorder %s1051_s15, %s1051_s15 }
  0x56   :  { %850 = vmatprep.subr.bf16.mxu1 %v1089_v0 }
  0x57   :  { %p1058_p7 = por %p1057_p6, %p1056_p5 }
  0x59   :  { %851 = vmatpush3.bf16.msra.mxu1 %v932_v8  ;;  %p1059_p8 = pnand %p1058_p7, %p1052_p4 }
  0x5a   :  { %872 = vmatprep.subr.bf16.mxu1 %v1089_v0 }
 0x123   :  { %v121_v10 = vpop.f32.mrb[0].mxu1 }
 0x124   :  { %v1181_v11 = vadd.f32 %v768_v9, %v121_v10  ;;  %v844_v12 = vpop.f32.mrb[1].mxu1  ;;  %v791_v10 = vld [vmem:[#allocation8 + $0x3] ss:$0 sm:$0xff] }
 0x125   :  { %v124_v13 = vpop.f32.mrb[2].mxu1 }
 0x126   :  { %v127_v14 = vmax.f32 %v1181_v11, 0.0  ;;  %v845_v15 = vpop.f32.mrb[3].mxu1 }
 0x128   :  { %v134_v16 = vpack.c.bf16 %v127_v14, %v127_v14 }
 0x12a   :  { %853 = vmatmul.mubr.msk.bf16.vlgmr.msra.gmra.mrb[4].mxu1 %vm158_vm3, %v134_v16 }
 0x12b   :  { %882 = vmatprep.mubr.msk.bf16.mxu1 %vm1090_vm0, %v1089_v0  ;;  %873 = vmatpush3.bf16.msra.mxu1 %v937_v39  ;;  %v798_v39 = vld [vmem:[#allocation8 + $0x6] ss:$0 sm:$0xff] }
 0x12c   :  { %874 = vmatprep.subr.bf16.mxu1 %v1089_v0 }
 0x12f   :  { %875 = vmatpush3.bf16.msra.mxu1 %v938_v40 }
 0x130   :  { %876 = vmatprep.subr.bf16.mxu1 %v1089_v0 }
 0x133   :  { %877 = vmatpush3.bf16.msra.mxu1 %v939_v41 }
 0x134   :  { %878 = vmatprep.subr.bf16.mxu1 %v1089_v0 }
 0x137   :  { %879 = vmatpush3.bf16.msra.mxu1 %v940_v49 }
 0x138   :  { %880 = vmatprep.subr.bf16.mxu1 %v1089_v0 }
 0x13b   :  { %881 = vmatpush3.bf16.msra.mxu1 %v941_v50 }
 0x13c   :  { %908 = vmatprep.subr.bf16.mxu1 %v1089_v0 }
 0x1fd   :  { %v196_v21 = vpop.f32.mrb[4].mxu1 }
 0x1fe   :  { %v197_v22 = vadd.f32 %v770_v20, %v196_v21  ;;  %v854_v23 = vpop.f32.mrb[5].mxu1 }
 0x1ff   :  { %v199_v24 = vpop.f32.mrb[6].mxu1  ;;  %v946_v23 = vld [vmem:[#allocation7 + $0x7c] sm:$0xff]  }
 0x200   :  { %v775_v25 = vmul.f32 -1.442695, %v197_v22  ;;  %v855_v26 = vpop.f32.mrb[7].mxu1  ;;  %v208_v32 = vmax.f32 %v197_v22, 0.0  ;;  %v945_v22 = vld [vmem:[#allocation7 + $0x74] sm:$0xff]   ;;  %v947_v24 = vld [vmem:[#allocation7 + $0x84] sm:$0xff]  }
 0x202   :  { %951 = vpow2.f32 %v775_v25  ;;  %v948_v25 = vld [vmem:[#allocation7 + $0x8c] sm:$0xff]  }
 0x20c   :  { %v952_v27 = vpop.eup %951 }
 0x20d   :  { %v205_v28 = vadd.f32 1.0, %v952_v27 }
 0x20f   :  { %953 = vrcp.f32 %v205_v28 }
 0x219   :  { %v1192_v31 = vpop.eup %953 }
 0x21a   :  { %v213_v33 = vmul.f32 %v1192_v31, %v211_v5 }
 0x21c   :  { %v214_v34 = vsel %vm212_vm4, %v213_v33, %v208_v32  ;;  %v796_v32 = vld [vmem:[#allocation8 + $0x4] ss:$0 sm:$0xff] }
 0x21d   :  { %v218_v36 = vpack.c.bf16 %v214_v34, %v214_v34  ;;  %v797_v34 = vld [vmem:[#allocation8 + $0x5] ss:$0 sm:$0xff] }
 0x21f   :  { %861 = vmatmul.mubr.msk.bf16.vlgmr.msra.gmra.mrb[0].mxu0 %vm233_vm5, %v218_v36 }
 0x220   :  { %865 = vmatpush3.bf16.msra.mxu0 %v935_v35  ;;  %868 = vmatprep.mubr.msk.bf16.mxu0 %vm1090_vm0, %v1089_v0 }
 0x221   :  { %866 = vmatprep.subr.bf16.mxu0 %v1089_v0 }
 0x224   :  { %867 = vmatpush3.bf16.msra.mxu0 %v297_v38 }
 0x225   :  { %886 = vmatprep.subr.bf16.mxu0 %v1089_v0 }
 0x2f2   :  { %v274_v43 = vpop.f32.mrb[0].mxu0 }
 0x2f3   :  { %v1205_v44 = vadd.f32 %v776_v42, %v274_v43  ;;  %v862_v45 = vpop.f32.mrb[1].mxu0 }
 0x2f4   :  { %v277_v46 = vpop.f32.mrb[2].mxu0 }
 0x2f5   :  { %v283_v47 = vpack.c.bf16 %v1205_v44, %v1205_v44  ;;  %v863_v48 = vpop.f32.mrb[3].mxu0 }
 0x2f7   :  { %869 = vmatmul.mubr.msk.bf16.vlgmr.msra.gmra.mrb[4].mxu0 %vm233_vm5, %v283_v47 }
 0x2f8   :  { %892 = vmatprep.mubr.msk.bf16.mxu0 %vm1090_vm0, %v1089_v0  ;;  %887 = vmatpush3.bf16.msra.mxu0 %v942_v58  ;;  %v804_v58 = vld [vmem:[#allocation8 + $0x7] ss:$0 sm:$0xff] }
 0x2f9   :  { %888 = vmatprep.subr.bf16.mxu0 %v1089_v0 }
 0x2fc   :  { %889 = vmatpush3.bf16.msra.mxu0 %v943_v59 }
 0x2fd   :  { %890 = vmatprep.subr.bf16.mxu0 %v1089_v0 }
 0x300   :  { %891 = vmatpush3.bf16.msra.mxu0 %v944_v60  ;;  %v805_v60 = vld [vmem:[#allocation8 + $0x8] ss:$0 sm:$0xff] }
 0x301   :  { %896 = vmatprep.subr.bf16.mxu0 %v1089_v0 }
 0x3ca   :  { %v333_v51 = vpop.f32.mrb[4].mxu0 }
 0x3cb   :  { %v339_v52 = vadd.f32 %v333_v51, %v1181_v11  ;;  %v870_v53 = vpop.f32.mrb[5].mxu0 }
 0x3cc   :  { %v336_v54 = vpop.f32.mrb[6].mxu0  ;;  %v950_v53 = vld [vmem:[#allocation7 + $0x9c] sm:$0xff]  }
 0x3cd   :  { %v340_v55 = vmax.f32 %v339_v52, 0.0  ;;  %v871_v56 = vpop.f32.mrb[7].mxu0  ;;  %v949_v52 = vld [vmem:[#allocation7 + $0x94] sm:$0xff]  }
 0x3cf   :  { %v351_v57 = vpack.c.bf16 %v340_v55, %v340_v55 }
 0x3d1   :  { %883 = vmatmul.mubr.msk.bf16.vlgmr.msra.gmra.mrb[8].mxu1 %vm387_vm6, %v351_v57 }
 0x3d2   :  { %912 = vmatprep.mubr.msk.bf16.mxu1 %vm1090_vm0, %v1089_v0  ;;  %909 = vmatpush3.bf16.msra.mxu1 %v949_v52 }
 0x3d3   :  { %910 = vmatprep.subr.bf16.mxu1 %v1089_v0 }
 0x3d6   :  { %911 = vmatpush3.bf16.msra.mxu1 %v950_v53 }
 0x4a4   :  { %v425_v62 = vpop.f32.mrb[8].mxu1 }
 0x4a5   :  { %v426_v63 = vadd.f32 %v783_v61, %v425_v62  ;;  %v884_v1 = vpop.f32.mrb[9].mxu1 }
 0x4a6   :  { %v428_v2 = vpop.f32.mrb[10].mxu1 }
 0x4a7   :  { %436 = vrot.lane.b32.xlu0 %v426_v63, %s1091_s3  ;;  %v885_v3 = vpop.f32.mrb[11].mxu1 }
 0x4ab   :  { %440 = vrot.lane.b32.xlu0 %v790_v4, %s1092_s11 }
 0x519   :  { %v437_v5 = vpop.permute.xlu0 %436 }
 0x51a   :  { %v444_v6 = vsel %vm443_vm7, %v1205_v44, %v437_v5 }
 0x51d   :  { %v441_v7 = vpop.permute.xlu0 %440 }
 0x51e   :  { %v446_v8 = vsel %vm445_vm8, %v444_v6, %v441_v7 }
 0x51f   :  { %v453_v9 = vpack.c.bf16 %v446_v8, %v446_v8 }
 0x521   :  { %893 = vmatmul.mubr.msk.bf16.vlgmr.msra.gmra.mrb[8].mxu0 %vm158_vm3, %v453_v9 }
 0x522   :  { %904 = vmatprep.mubr.msk.bf16.mxu0 %vm1090_vm0, %v1089_v0  ;;  %897 = vmatpush3.bf16.msra.mxu0 %v945_v22 }
 0x523   :  { %898 = vmatprep.subr.bf16.mxu0 %v1089_v0 }
 0x526   :  { %899 = vmatpush3.bf16.msra.mxu0 %v946_v23 }
 0x527   :  { %900 = vmatprep.subr.bf16.mxu0 %v1089_v0 }
 0x52a   :  { %901 = vmatpush3.bf16.msra.mxu0 %v947_v24 }
 0x52b   :  { %902 = vmatprep.subr.bf16.mxu0 %v1089_v0 }
 0x52e   :  { %903 = vmatpush3.bf16.msra.mxu0 %v948_v25 }
 0x5f4   :  { %v514_v11 = vpop.f32.mrb[8].mxu0 }
 0x5f5   :  { %v515_v12 = vadd.f32 %v791_v10, %v514_v11  ;;  %v894_v13 = vpop.f32.mrb[9].mxu0 }
 0x5f6   :  { %v517_v14 = vpop.f32.mrb[10].mxu0 }
 0x5f7   :  { %v895_v15 = vpop.f32.mrb[11].mxu0  ;;  %v523_v16 = vsel %vm522_vm9, %v515_v12, 0.0 }
 0x5f8   :  { %524 = vadd.xlane.f32.xlu1 %v523_v16 }
 0x685   :  { %v525_v17 = vpop.xlane.xlu1 %524 }
 0x686   :  { %v527_v18 = vmul.f32 0.015625, %v525_v17 }
 0x688   :  { %v528_v19 = vsub.f32 %v515_v12, %v527_v18 }
 0x68a   :  { %v529_v20 = vmul.f32 %v528_v19, %v528_v19 }
 0x68c   :  { %v530_v21 = vsel %vm522_vm9, %v529_v20, 0.0 }
 0x68d   :  { %531 = vadd.xlane.f32.xlu1 %v530_v21 }
 0x71a   :  { %v532_v26 = vpop.xlane.xlu1 %531 }
 0x71b   :  { %v533_v27 = vmul.f32 0.015625, %v532_v26 }
 0x71d   :  { %v534_v28 = vadd.f32 1e-05, %v533_v27 }
 0x71f   :  { %955 = vrsqrt.f32 %v534_v28 }
 0x729   :  { %v956_v29 = vpop.eup %955 }
 0x72a   :  { %v536_v33 = vmul.f32 %v956_v29, %v528_v19 }
 0x72c   :  { %v541_v35 = vmul.f32 %v796_v32, %v536_v33 }
 0x72e   :  { %v546_v36 = vadd.f32 %v797_v34, %v541_v35 }
 0x730   :  { %v547_v37 = vmax.f32 %v546_v36, 0.0 }
 0x732   :  { %v556_v38 = vpack.c.bf16 %v547_v37, %v547_v37 }
 0x734   :  { %905 = vmatmul.mubr.msk.bf16.vlgmr.msra.gmra.mrb[12].mxu0 %vm522_vm9, %v556_v38 }
 0x807   :  { %v623_v40 = vpop.f32.mrb[12].mxu0 }
 0x808   :  { %v624_v41 = vadd.f32 %v798_v39, %v623_v40  ;;  %v906_v42 = vpop.f32.mrb[13].mxu0 }
 0x809   :  { %v626_v43 = vpop.f32.mrb[14].mxu0 }
 0x80a   :  { %v907_v45 = vpop.f32.mrb[15].mxu0  ;;  %v631_v46 = vsel %vm445_vm8, %v624_v41, 0.0 }
 0x80b   :  { %632 = vadd.xlane.f32.xlu0 %v631_v46 }
 0x898   :  { %v633_v47 = vpop.xlane.xlu0 %632 }
 0x899   :  { %v635_v48 = vmul.f32 0.03125, %v633_v47 }
 0x89b   :  { %v636_v49 = vsub.f32 %v624_v41, %v635_v48 }
 0x89d   :  { %v637_v50 = vmul.f32 %v636_v49, %v636_v49 }
 0x89f   :  { %v638_v51 = vsel %vm445_vm8, %v637_v50, 0.0 }
 0x8a0   :  { %639 = vadd.xlane.f32.xlu1 %v638_v51 }
 0x8b1   :  { %739 = vrot.lane.b32.xlu1 %v1205_v44, %s1091_s3 }
 0x8b5   :  { %743 = vrot.lane.b32.xlu1 %v1192_v31, %s1093_s12  ;;  %v806_v31 = vld [vmem:[#allocation8 + $0x9] ss:$0 sm:$0xff] }
 0x92d   :  { %v640_v54 = vpop.xlane.xlu1 %639 }
 0x92e   :  { %v641_v55 = vmul.f32 0.03125, %v640_v54 }
 0x930   :  { %v642_v56 = vadd.f32 1e-05, %v641_v55 }
 0x931   :  { %v740_v15 = vpop.permute.xlu1 %739 }
 0x932   :  { %957 = vrsqrt.f32 %v642_v56 }
 0x935   :  { %v744_v20 = vpop.permute.xlu1 %743 }
 0x93c   :  { %v958_v57 = vpop.eup %957 }
 0x93d   :  { %v644_v59 = vmul.f32 %v958_v57, %v636_v49 }
 0x93f   :  { %v649_v61 = vmul.f32 %v804_v58, %v644_v59 }
 0x941   :  { %v654_v62 = vadd.f32 %v805_v60, %v649_v61 }
 0x943   :  { %v655_v44 = vmax.f32 %v654_v62, 0.0 }
 0x945   :  { %v660_v63 = vpack.c.bf16 %v655_v44, %v655_v44 }
 0x947   :  { %913 = vmatmul.mubr.msk.bf16.vlgmr.msra.gmra.mrb[12].mxu1 %vm445_vm8, %v660_v63 }
 0xa1a   :  { %v715_v1 = vpop.f32.mrb[12].mxu1 }
 0xa1b   :  { %v716_v2 = vadd.f32 %v806_v31, %v715_v1  ;;  %v914_v3 = vpop.f32.mrb[13].mxu1 }
 0xa1c   :  { %v718_v0 = vpop.f32.mrb[14].mxu1 }
 0xa1d   :  { %v722_v4 = vmin.f32 %v716_v2, 20.0  ;;  %v915_v5 = vpop.f32.mrb[15].mxu1  ;;  %vm721_vm11 = vcmp.gt.f32.partialorder %v716_v2, 20.0 }
 0xa1f   :  { %v723_v6 = vmul.f32 1.442695, %v722_v4 }
 0xa21   :  { %959 = vpow2.f32 %v723_v6 }
 0xa2b   :  { %v960_v7 = vpop.eup %959 }
 0xa2c   :  { %v725_v8 = vadd.f32 1.0, %v960_v7  ;;  %v728_v9 = vmul.f32 -0.5, %v960_v7  ;;  %v731_v11 = vand.u32 2147483647, %v960_v7 }
 0xa2e   :  { %961 = vlog2.f32 %v725_v8  ;;  %v729_v10 = vadd.f32 1.0, %v728_v9  ;;  %vm732_vm10 = vcmp.lt.f32.partialorder %v731_v11, 0.0004427343 }
 0xa30   :  { %v730_v14 = vmul.f32 %v960_v7, %v729_v10 }
 0xa38   :  { %v962_v12 = vpop.eup %961 }
 0xa39   :  { %v727_v13 = vmul.f32 0.6931472, %v962_v12 }
 0xa3b   :  { %v733_v16 = vsel %vm732_vm10, %v730_v14, %v727_v13 }
 0xa3c   :  { %v734_v17 = vsel %vm721_vm11, %v716_v2, %v733_v16 }
 0xa3d   :  { %v735_v18 = vadd.f32 1e-06, %v734_v17 }
 0xa3f   :  { %v737_v19 = vsel %vm736_vm12, %v716_v2, %v735_v18 }
 0xa40   :  { %v746_v21 = vsel %vm445_vm8, %v737_v19, %v740_v15 }
 0xa41   :  { %v748_v22 = vsel %vm747_vm13, %v746_v21, %v744_v20 }
 0xa42   :  { %750 = vst.msk [vmem:[#allocation10] sm:$0xff] %vm749_vm14, %v748_v22 }
 0xa43   :  { %1062 = shalt.err (!%p1059_p8)
}
 0xa44   :  { %s1063_s19 = scalar_lea.hbm %s1257_s4, 128 }
 0xa45   :  { %p1064_p9 = scmp.ne.s32.totalorder %s1257_s4, %s1063_s19  ;;  %p1067_p10 = scmp.lt.u32.totalorder %s1063_s19, %s1257_s4 }
 0xa47   :  { %p1069_p11 = pnand %p1067_p10, %p1064_p9 }
 0xa49   :  { %1072 = shalt.err (!%p1069_p11)
}
 0xa4a   :  { %760 = dma.vmem_to_hbm [thread:$0]  %s758_s14, 128, %s1257_s4, [#allocation4]  }
 0xa4b   :  { %1079 = dma.done.wait [#allocation4], 128  }
 0xa4c   :  { %1080 = vsyncadd [#allocation4], 4294967168 }
 0xa4d   :  { %764 = vsyncpa [#allocation3], 1 }
 0xa4e   :  { %765 = vsyncpa [#allocation6], 1 }
 0xa4f   :  { %766 = vsyncpa [#allocation9], 1 }
 0xa50   :  { %767 = vsyncpa [#allocation4], 1 }

</bundles_post_ra>
